<compile_context>
chip_gen: v7x
topology: tpu7x:2x2x1
jax: 0.10.0
libtpu: 0.0.40
codegen_flags: <defaults>
</compile_context>

<pallas_src>
import functools

import jax
import jax.numpy as jnp
from jax.experimental import pallas as pl
from jax.experimental.pallas import tpu as pltpu

IN_F, H1, H2 = 30, 16, 8
IN_PAD = 32   # 30 features + 1 bias-ones row + 1 zero row -> 8-aligned sublanes


def _mlp_kernel(xT_ref, w1p_ref, w2p_ref, w3p_ref, o_ref):
    """One batch tile: augmented x tile (32, TB) -> sigmoid(logits) tile (1, TB)."""
    xT = xT_ref[...]          # (32, TB): rows 0..29 = features, row 30 = ones, row 31 = 0
    w1p = w1p_ref[...]        # (16, 32) = [W1^T | b1 | 0]
    w2p = w2p_ref[...]        # (8, 17)  = [W2^T | b2]
    w3p = w3p_ref[...]        # (9, 1)   = [w3 ; b3]

    # layer 1: bias folded into the matmul via the ones row      (MXU)
    h1 = jnp.maximum(
        jnp.dot(w1p, xT, preferred_element_type=jnp.float32), 0.0)          # (16, TB)

    # layer 2: (8,16) @ (16,TB) + b2, ReLU                        (MXU)
    h2 = jnp.dot(w2p[:, :H1], h1, preferred_element_type=jnp.float32)
    h2 = jnp.maximum(h2 + w2p[:, H1:H1 + 1], 0.0)                           # (8, TB)

    # layer 3: 8 -> 1 as VPU broadcast-multiply + sublane reduce (skip the MXU)
    logits = jnp.sum(w3p[:H2, :] * h2, axis=0, keepdims=True) + w3p[H2:H2 + 1, :]
    o_ref[...] = jax.nn.sigmoid(logits).astype(o_ref.dtype)                 # (1, TB) EUP


@functools.partial(jax.jit, static_argnames=("tb",))
def binary_classifier_forward(x, w1, b1, w2, b2, w3, b3, *, tb=512):
    """x: (B, 30) -> probabilities (B, 1).

    Weights use the (in_features, out_features) convention; biases are (1, out).
    `tb` is the batch tile size (must be a multiple of 128)."""
    assert tb % 128 == 0, "batch tile must be a multiple of 128 (lane width)"
    B = x.shape[0]

    # Don't over-pad tiny batches: shrink the tile to the 128-rounded batch.
    tb_eff = min(tb, 128 * pl.cdiv(B, 128))
    n_tiles = pl.cdiv(B, tb_eff)
    Bp = n_tiles * tb_eff

    # Lane-dense layout: batch on the last (lane) axis; append ones/zero rows and
    # zero-pad the batch to a tile multiple.
    xT = x.astype(jnp.float32).T                                      # (30, B)
    x_aug = jnp.concatenate(
        [xT, jnp.ones((1, B), jnp.float32), jnp.zeros((1, B), jnp.float32)], axis=0)
    x_aug = jnp.pad(x_aug, ((0, 0), (0, Bp - B)))                     # (32, Bp)

    # Fold biases into the weight operands (4 operands instead of 7).
    w1p = jnp.concatenate(
        [w1.T.astype(jnp.float32), b1.T.astype(jnp.float32),
         jnp.zeros((H1, 1), jnp.float32)], axis=1)                    # (16, 32)
    w2p = jnp.concatenate([w2.T, b2.T], axis=1).astype(jnp.float32)   # (8, 17)
    w3p = jnp.concatenate([w3, b3], axis=0).astype(jnp.float32)       # (9, 1)

    outT = pl.pallas_call(
        _mlp_kernel,
        out_shape=jax.ShapeDtypeStruct((1, Bp), jnp.float32),
        grid_spec=pltpu.PrefetchScalarGridSpec(
            num_scalar_prefetch=0,
            grid=(n_tiles,),
            in_specs=[
                pl.BlockSpec((IN_PAD, tb_eff), lambda i: (0, i)),   # stream x tiles
                pl.BlockSpec(w1p.shape, lambda i: (0, 0)),          # weights resident
                pl.BlockSpec(w2p.shape, lambda i: (0, 0)),
                pl.BlockSpec(w3p.shape, lambda i: (0, 0)),
            ],
            out_specs=pl.BlockSpec((1, tb_eff), lambda i: (0, i)),
        ),
        compiler_params=pltpu.CompilerParams(
            # Batch tiles are independent -> shard across the 2 TCs on v7x.
            dimension_semantics=("parallel",)),
    )(x_aug, w1p, w2p, w3p)

    return outT[0, :B].reshape(B, 1)


def init_params(key):
    """Mimics PyTorch nn.Linear default init: U[-1/sqrt(fan_in), 1/sqrt(fan_in)].

    Weights are stored as (in_features, out_features); biases as (1, out_features)."""
    def linear(key, fan_in, fan_out):
        kw, kb = jax.random.split(key)
        bound = 1.0 / jnp.sqrt(fan_in)
        w = jax.random.uniform(kw, (fan_in, fan_out), jnp.float32, -bound, bound)
        b = jax.random.uniform(kb, (1, fan_out), jnp.float32, -bound, bound)
        return w, b

    k1, k2, k3 = jax.random.split(key, 3)
    w1, b1 = linear(k1, IN_F, H1)
    w2, b2 = linear(k2, H1, H2)
    w3, b3 = linear(k3, H2, 1)
    return w1, b1, w2, b2, w3, b3


def reference_forward(x, w1, b1, w2, b2, w3, b3):
    h1 = jnp.maximum(x @ w1 + b1, 0.0)
    h2 = jnp.maximum(h1 @ w2 + b2, 0.0)
    return jax.nn.sigmoid(h2 @ w3 + b3)


if __name__ == "__main__":
    key = jax.random.PRNGKey(0)
    kx, kp = jax.random.split(key)

    # B deliberately not a multiple of 128/tile to exercise the padding path;
    # tb=128 gives a 2-step grid (multi-tile pipelining) at small scale.
    B = 200
    x = jax.random.normal(kx, (B, 30), jnp.float32)
    params = init_params(kp)

    out = binary_classifier_forward(x, *params, tb=128)
    out = jax.block_until_ready(out)

    ref = reference_forward(x, *params)
    assert out.shape == (B, 1), out.shape
    assert jnp.allclose(out, ref, atol=1e-5, rtol=1e-5), (out, ref)

    print("KERNEL_OK")
</pallas_src>

<mosaic_0001>
module attributes {stable_mosaic.version = 11 : i64} {
  func.func @_mlp_kernel(%arg0: i32, %arg1: memref<32x128xf32, #tpu.memory_space<vmem>>, %arg2: memref<16x32xf32, #tpu.memory_space<vmem>>, %arg3: memref<8x17xf32, #tpu.memory_space<vmem>>, %arg4: memref<9x1xf32, #tpu.memory_space<vmem>>, %arg5: memref<1x128xf32, #tpu.memory_space<vmem>>) attributes {dimension_semantics = [#tpu.dimension_semantics<parallel>], iteration_bounds = array<i64: 2>, scalar_prefetch = 0 : i64, scratch_operands = 0 : i64, tpu.core_type = #tpu.core_type<tc>, window_params = [{transform_indices = @transform_0, window_bounds = array<i64: 32, 128>}, {pipeline_mode = #tpu.pipeline_mode<synchronous>, transform_indices = @transform_1, window_bounds = array<i64: 16, 32>}, {pipeline_mode = #tpu.pipeline_mode<synchronous>, transform_indices = @transform_2, window_bounds = array<i64: 8, 17>}, {pipeline_mode = #tpu.pipeline_mode<synchronous>, transform_indices = @transform_3, window_bounds = array<i64: 9, 1>}, {transform_indices = @transform_4, window_bounds = array<i64: 1, 128>}]} {
    %c0 = arith.constant 0 : index
    %c0_0 = arith.constant 0 : index
    %0 = vector.load %arg1[%c0, %c0_0] : memref<32x128xf32, #tpu.memory_space<vmem>>, vector<32x128xf32>
    %c0_1 = arith.constant 0 : index
    %c0_2 = arith.constant 0 : index
    %1 = vector.load %arg2[%c0_1, %c0_2] : memref<16x32xf32, #tpu.memory_space<vmem>>, vector<16x32xf32>
    %c0_3 = arith.constant 0 : index
    %c0_4 = arith.constant 0 : index
    %2 = vector.load %arg3[%c0_3, %c0_4] : memref<8x17xf32, #tpu.memory_space<vmem>>, vector<8x17xf32>
    %c0_5 = arith.constant 0 : index
    %c0_6 = arith.constant 0 : index
    %3 = vector.load %arg4[%c0_5, %c0_6] : memref<9x1xf32, #tpu.memory_space<vmem>>, vector<9x1xf32>
    %cst = arith.constant dense<0.000000e+00> : vector<16x128xf32>
    %4 = tpu.matmul %1, %0, %cst {dimension_numbers = #tpu.dot_dimension_numbers<[1], [0], [0], [1], [0, 0, 1, 1], [], []>} : vector<16x32xf32>, vector<32x128xf32>, vector<16x128xf32> -> vector<16x128xf32>
    %cst_7 = arith.constant 0.000000e+00 : f32
    %5 = vector.broadcast %cst_7 : f32 to vector<16x128xf32>
    %6 = arith.maximumf %4, %5 : vector<16x128xf32>
    %7 = vector.extract_strided_slice %2 {offsets = [0, 0], sizes = [8, 16], strides = [1, 1]} : vector<8x17xf32> to vector<8x16xf32>
    %cst_8 = arith.constant dense<0.000000e+00> : vector<8x128xf32>
    %8 = tpu.matmul %7, %6, %cst_8 {dimension_numbers = #tpu.dot_dimension_numbers<[1], [0], [0], [1], [0, 0, 1, 1], [], []>} : vector<8x16xf32>, vector<16x128xf32>, vector<8x128xf32> -> vector<8x128xf32>
    %9 = vector.extract_strided_slice %2 {offsets = [0, 16], sizes = [8, 1], strides = [1, 1]} : vector<8x17xf32> to vector<8x1xf32>
    %10 = vector.broadcast %9 : vector<8x1xf32> to vector<8x128xf32>
    %11 = arith.addf %8, %10 : vector<8x128xf32>
    %cst_9 = arith.constant 0.000000e+00 : f32
    %12 = vector.broadcast %cst_9 : f32 to vector<8x128xf32>
    %13 = arith.maximumf %11, %12 : vector<8x128xf32>
    %14 = vector.extract_strided_slice %3 {offsets = [0, 0], sizes = [8, 1], strides = [1, 1]} : vector<9x1xf32> to vector<8x1xf32>
    %15 = vector.broadcast %14 : vector<8x1xf32> to vector<8x128xf32>
    %16 = arith.mulf %15, %13 : vector<8x128xf32>
    %cst_10 = arith.constant dense<0.000000e+00> : vector<128xf32>
    %17 = vector.multi_reduction <add>, %16, %cst_10 [0] : vector<8x128xf32> to vector<128xf32>
    %18 = vector.shape_cast %17 : vector<128xf32> to vector<1x128xf32>
    %19 = vector.extract_strided_slice %3 {offsets = [8, 0], sizes = [1, 1], strides = [1, 1]} : vector<9x1xf32> to vector<1x1xf32>
    %20 = vector.broadcast %19 : vector<1x1xf32> to vector<1x128xf32>
    %21 = arith.addf %18, %20 : vector<1x128xf32>
    %22 = arith.negf %21 : vector<1x128xf32>
    %23 = math.exp %22 : vector<1x128xf32>
    %cst_11 = arith.constant 1.000000e+00 : f32
    %24 = vector.broadcast %cst_11 : f32 to vector<1x128xf32>
    %25 = arith.addf %24, %23 : vector<1x128xf32>
    %26 = arith.divf %24, %25 : vector<1x128xf32>
    %c0_12 = arith.constant 0 : index
    %c0_13 = arith.constant 0 : index
    %27 = vector.load %arg5[%c0_12, %c0_13] : memref<1x128xf32, #tpu.memory_space<vmem>>, vector<1x128xf32>
    tpu.vector_store %arg5[%c0_12, %c0_13], %26 {strides = array<i32>} : memref<1x128xf32, #tpu.memory_space<vmem>>, vector<1x128xf32>,
    return
  }
  func.func @transform_0(%arg0: i32) -> (i32, i32) {
    %c0_i32 = arith.constant 0 : i32
    %c0_i32_0 = arith.constant 0 : i32
    return %c0_i32, %arg0 : i32, i32
  }
  func.func @transform_1(%arg0: i32) -> (i32, i32) {
    %c0_i32 = arith.constant 0 : i32
    %c0_i32_0 = arith.constant 0 : i32
    %c0_i32_1 = arith.constant 0 : i32
    return %c0_i32, %c0_i32_0 : i32, i32
  }
  func.func @transform_2(%arg0: i32) -> (i32, i32) {
    %c0_i32 = arith.constant 0 : i32
    %c0_i32_0 = arith.constant 0 : i32
    %c0_i32_1 = arith.constant 0 : i32
    return %c0_i32, %c0_i32_0 : i32, i32
  }
  func.func @transform_3(%arg0: i32) -> (i32, i32) {
    %c0_i32 = arith.constant 0 : i32
    %c0_i32_0 = arith.constant 0 : i32
    %c0_i32_1 = arith.constant 0 : i32
    return %c0_i32, %c0_i32_0 : i32, i32
  }
  func.func @transform_4(%arg0: i32) -> (i32, i32) {
    %c0_i32 = arith.constant 0 : i32
    %c0_i32_0 = arith.constant 0 : i32
    return %c0_i32, %arg0 : i32, i32
  }
}

</mosaic_0001>

<bundles_post_ra>
// kernel: binary_classifier_forward.1
= control target key start
LH: loop header
LB: loop body
LE: loop exit
PB: predicated region body
PF: predicated region fallthrough
CT: control target
= control target key end

     0   :  { %s632_s15 = smov 0   ;;  %s634_s16 = smov 0   ;;  %s701_s0 = inlined_call_operand.vmem [shape: f32[32,256], index: 0, kind: input, shape index: {}]   ;;  %s702_s1 = inlined_call_operand.vmem [shape: f32[16,32], index: 1, kind: input, shape index: {}]   ;;  %s703_s2 = inlined_call_operand.vmem [shape: f32[8,17], index: 2, kind: input, shape index: {}]   ;;  %s704_s3 = inlined_call_operand.vmem [shape: f32[9,1], index: 3, kind: input, shape index: {}]   ;;  %s705_s4 = inlined_call_operand.vmem [shape: f32[1,256], index: 4, kind: output, shape index: {}]  }
   0x1   :  { %s636_s17 = smov 0  }
   0x2 LB: > { %s490_s18 = sadd.s32 4294967295, %s600_s17   ;;  %s649_s19 = sadd.s32 1, %s600_s17   ;;  %s600_s17 = sphi %s636_s17, %s708_s17   ;;  %s596_s16 = sphi %s634_s16, %s707_s16   ;;  %s592_s15 = sphi %s632_s15, %s706_s15  }
   0x3   : > { %s18_s20 = ssub.s32 %s600_s17, %s649_s19  ;;  %s21_s21 = sadd.s32 1, %s596_s16 }
   0x4   : > { %p19_p0 = scmp.eq.s32.totalorder %s18_s20, 0  ;;  %p28_p1 = scmp.ne.s32.totalorder %s596_s16, %s592_s15 }
   0x5   : > { %p29_p2 = scmp.eq.s32.totalorder %s600_s17, 0  ;;  %p493_p4 = scmp.ge.s32.totalorder %s600_s17, 2 }
   0x6   : > { %s658_s22 = scalar_select %p19_p0, %s596_s16, %s21_s21  }
   0x7   : > { %p30_p3 = por %p29_p2, %p28_p1  ;;  %152 = sbr.rel (%p493_p4) target bundleno = 21 (0x15), region = 28 }
   0xe   : > { %155 = sbr.rel (!%p30_p3) target bundleno = 21 (0x15), region = 32  ;;  %s157_s23 = sand.u32 (%p30_p3), 1, %s596_s16  }
   0xf   : > { %s495_s24 = sshll.u32 (%p30_p3), %s600_s17, 3  ;;  %s494_s25 = sshll.u32 (%p30_p3), %s157_s23, 5 }
  0x10   : > { %s161_s28 = scalar_lea.vmem (%p30_p3), %s701_s0, %s495_s24  ;;  %s159_s29 = scalar_lea.vmem (%p30_p3), [#allocation2], %s494_s25 }
  0x11   : > { %v195_v0 = vld [vmem:[%s161_s28] sm:$0xff] (%p30_p3)  ;;  %v197_v1 = vld [vmem:[%s161_s28 + $0x10] sm:$0xff] (%p30_p3) }
  0x12   : > { %v199_v2 = vld [vmem:[%s161_s28 + $0x20] sm:$0xff] (%p30_p3)  ;;  %196 = vst [vmem:[%s159_s29] sm:$0xff] (%p30_p3), %v195_v0  ;;  %198 = vst [vmem:[%s159_s29 + $0x8] sm:$0xff] (%p30_p3), %v197_v1  ;;  %v201_v3 = vld [vmem:[%s161_s28 + $0x30] sm:$0xff] (%p30_p3) }
  0x13   : > { %200 = vst [vmem:[%s159_s29 + $0x10] sm:$0xff] (%p30_p3), %v199_v2  ;;  %202 = vst [vmem:[%s159_s29 + $0x18] sm:$0xff] (%p30_p3), %v201_v3 }
  0x15 PF: > { %p496_p5 = scmp.ge.s32.totalorder %s600_s17, 1  ;;  %p207_p6 = scmp.lt.s32.totalorder %s600_s17, 3 }
  0x17   : > { %p208_p7 = pnand %p496_p5, %p207_p6 }
  0x18   : > { %s214_s30 = sand.u32 (!%p208_p7), 1, %s592_s15   ;;  %v244_v4 = vld [vmem:[%s702_s1] sm:$0xff] (!%p208_p7)  ;;  %vm249_vm0 = vcmask (!%p208_p7), 261120   ;;  %v245_v11 = vld [vmem:[%s702_s1 + $0x8] sm:$0xff] (!%p208_p7)  ;;  %v602_v12 = vmov (!%p208_p7), 0.0|0.0   ;;  %vm603_vm1 = vmmov (!%p208_p7), 0  }
  0x19   : > { %211 = sbr.rel (%p208_p7) target bundleno = 517 (0x205), region = 70  ;;  %s497_s7 = sshll.u32 (!%p208_p7), %s214_s30, 5  ;;  %521 = vmatprep.mubr.msk.f32.mxu0 (!%p208_p7), %vm249_vm0, %v244_v4  ;;  %539 = vmatprep.subr.bf16.mxu1 (!%p208_p7), %v602_v12  ;;  %v604_v13 = vmov (!%p208_p7), 0.0   ;;  %v248_v14 = vld [vmem:[%s704_s3 + $0x8] sm:$0x1] (!%p208_p7)  ;;  %v246_v15 = vld [vmem:[%s703_s2] sm:$0xff] (!%p208_p7) }
  0x1a   : > { %s216_s8 = scalar_lea.vmem (!%p208_p7), [#allocation2], %s497_s7  ;;  %528 = vmatprep.mubr.msk.f32.mxu1 (!%p208_p7), %vm603_vm1, %v604_v13  ;;  %v605_v16 = vmov (!%p208_p7), 16   ;;  %v606_v17 = vmov (!%p208_p7), 0   ;;  %v247_v18 = vld [vmem:[%s704_s3] sm:$0xff] (!%p208_p7)  ;;  %vm338_vm2 = vcmask (!%p208_p7), 130048   ;;  %p237_p8 = scmp.lt.s32.totalorder (!%p208_p7), %s490_s18, 1 }
  0x1b   : > { %v240_v5 = vld [vmem:[%s216_s8] sm:$0xff] (!%p208_p7)  ;;  %v241_v6 = vld [vmem:[%s216_s8 + $0x8] sm:$0xff] (!%p208_p7)  ;;  %v242_v7 = vld [vmem:[%s216_s8 + $0x10] sm:$0xff] (!%p208_p7)  ;;  %571 = vset.pattern.permute.xlu0 (!%p208_p7), %v605_v16  ;;  %573 = vset.pattern.permute.xlu1 (!%p208_p7), %v606_v17 }
  0x1c   : > { %v531_v8 = vpack.c.bf16 (!%p208_p7), %v241_v6, %v240_v5  ;;  %v243_v9 = vld [vmem:[%s216_s8 + $0x18] sm:$0xff] (!%p208_p7)  ;;  %335 = vperm.xlu0 (!%p208_p7), %571, %v246_v15   ;;  %426 = vperm.xlu1 (!%p208_p7), %573, %v248_v14  }
  0x1d   : > { %v535_v10 = vpack.c.bf16 (!%p208_p7), %v243_v9, %v242_v7 }
  0x1e   : > { %532 = vmatprep.subr.bf16.mxu0 (!%p208_p7), %v531_v8 }
  0x1f   : > { %534 = vmatpush3.bf16.msra.mxu0 (!%p208_p7), %v531_v8 }
  0x20   : > { %536 = vmatprep.subr.bf16.mxu0 %v535_v10  ;;  %572 = vset.pattern.permute.xlu0 %v606_v17  ;;  %s710_s18 = smov (!%p237_p8, %s490_s18), 1 }
  0x21   : > { %414 = vperm.xlu0 %572, %v247_v18   ;;  %s239_s24 = scalar_lea.vmem %s705_s4, %s710_s18 }
  0x23   : > { %538 = vmatpush3.bf16.msra.mxu0 %v535_v10 }
  0x26   : > { %522 = vmatmul.mubr.msk.f32.vlgmr.msra.gmra.mrb[0].mxu0 %vm249_vm0, %v245_v11 }
  0x9b   : > { %v336_v24 = vpop.permute.xlu0 %335  ;;  %v427_v36 = vpop.permute.xlu1 %426 }
  0xa0   : > { %v415_v28 = vpop.permute.xlu0 %414 }
  0xf9   : > { %v523_v19 = vpop.f32.mrb[0].mxu0 }
  0xfa   : > { %v332_v20 = vmax.f32 %v523_v19, 0.0  ;;  %v322_v21 = vpop.f32.mrb[1].mxu0 }
  0xfb   : > { %v331_v22 = vmax.f32 %v322_v21, 0.0 }
  0xfd   : > { %v540_v23 = vpack.c.bf16 %v332_v20, %v331_v22 }
  0xff   : > { %541 = vmatpush3.bf16.msra.mxu1 %v540_v23 }
 0x102   : > { %529 = vmatmul.mubr.msk.f32.vlgmr.msra.gmra.mrb[0].mxu1 %vm338_vm2, %v246_v15 }
 0x1d5   : > { %v407_v25 = vpop.f32.mrb[0].mxu1 }
 0x1d6   : > { %v408_v26 = vadd.f32 %v407_v25, %v336_v24  ;;  %v530_v27 = vpop.f32.mrb[1].mxu1 }
 0x1d8   : > { %v411_v29 = vmax.f32 %v408_v26, 0.0 }
 0x1da   : > { %v417_v30 = vmul.f32 %v415_v28, %v411_v29 }
 0x1dc   : > { %v418_v31 = vrot.slane %v417_v30, 4 }
 0x1de   : > { %v419_v32 = vadd.f32 %v418_v31, %v417_v30 }
 0x1e0   : > { %v420_v33 = vrot.slane %v419_v32, 2 }
 0x1e2   : > { %v421_v34 = vadd.f32 %v420_v33, %v419_v32 }
 0x1e4   : > { %v422_v35 = vrot.slane %v421_v34, 1 }
 0x1e6   : > { %v423_v37 = vadd.f32 %v422_v35, %v421_v34 }
 0x1e8   : > { %v429_v38 = vadd.f32 %v427_v36, %v423_v37 }
 0x1ea   : > { %v501_v39 = vmul.f32 -1.442695, %v429_v38 }
 0x1ec   : > { %574 = vpow2.f32 %v501_v39 }
 0x1f6   : > { %v575_v40 = vpop.eup %574 }
 0x1f7   : > { %v433_v41 = vadd.f32 1.0, %v575_v40 }
 0x1f9   : > { %576 = vrcp.f32 %v433_v41 }
 0x203   : > { %v577_v42 = vpop.eup %576 }
 0x204   : > { %436 = vst [vmem:[%s239_s24] sm:$0x1] %v577_v42 }
 0x205 PF: > { %p11_p9 = scmp.ge.s32.totalorder %s649_s19, 4   ;;  %s706_s15 = smov %s596_s16 }
 0x206   : > { %s707_s16 = smov %s658_s22  ;;  %s708_s17 = smov %s649_s19 }
 0x207   :  { %13 = sbr.rel (!%p11_p9) target bundleno = 2 (0x2), region = 109 }

</bundles_post_ra>
